<compile_context>
chip_gen: v6e
topology: v6e:2x2x1
jax: 0.10.0
libtpu: 0.0.40
codegen_flags: <defaults>
</compile_context>

<pallas_src>
import jax
import jax.numpy as jnp
from jax.experimental import pallas as pl
from jax.experimental.pallas import tpu as pltpu


def _round_up(a, m):
    return (a + m - 1) // m * m


# ----------------------------------------------------------------------------
# Pallas kernel: one (N, t_hw) output tile of  W @ X[b] + bias  (per batch elem)
#   x_ref : (1, C, t_hw) f32   w_ref : (N, C) f32
#   b_ref : (N, 1)       f32   o_ref : (1, N, t_hw) f32
# Full C is contracted in one MXU pass; bf16 cast happens per-tile in VMEM.
# ----------------------------------------------------------------------------
def _conv1x1_kernel(x_ref, w_ref, b_ref, o_ref):
    x_bf = x_ref[0].astype(jnp.bfloat16)          # (C, t_hw)
    w_bf = w_ref[...].astype(jnp.bfloat16)        # (N, C)
    acc = jnp.dot(w_bf, x_bf, preferred_element_type=jnp.float32)   # (N, t_hw) f32
    o_ref[0] = acc + b_ref[...]                   # bias broadcast over lanes


def conv1x1_nchw(x, w, bias, *, t_hw_max=2048):
    """1x1 conv in NCHW.  x: (B,C,H,W) f32, w: (N,C) f32, bias: (N,) f32 -> (B,N,H,W) f32."""
    B, C, H, W = x.shape
    N, C2 = w.shape
    assert C == C2, (C, C2)
    HW = H * W

    x3 = x.reshape(B, C, HW)                      # free: same contiguous buffer

    if HW <= t_hw_max:
        # One full-extent lane block per batch element ("block == full dim" exception,
        # so no 128-multiple requirement and no padding at all).
        t_hw, HWp = HW, HW
    else:
        # Tile HW lane-densely; pad only up to one tile's worth of zeros.
        t_hw = t_hw_max                           # multiple of 128
        HWp = _round_up(HW, t_hw)
        if HWp != HW:
            x3 = jnp.pad(x3, ((0, 0), (0, 0), (0, HWp - HW)))

    b2 = bias.astype(jnp.float32).reshape(N, 1)

    cost = pl.CostEstimate(
        flops=2 * B * N * C * HWp,
        transcendentals=0,
        bytes_accessed=(B * C * HWp + N * C + N + B * N * HWp) * 4,
    )

    out = pl.pallas_call(
        _conv1x1_kernel,
        out_shape=jax.ShapeDtypeStruct((B, N, HWp), jnp.float32),
        grid_spec=pltpu.PrefetchScalarGridSpec(
            num_scalar_prefetch=0,
            grid=(B, HWp // t_hw),
            in_specs=[
                pl.BlockSpec((1, C, t_hw), lambda b, j: (b, 0, j)),  # X: per-batch HW tile
                pl.BlockSpec((N, C), lambda b, j: (0, 0)),           # W: whole weight
                pl.BlockSpec((N, 1), lambda b, j: (0, 0)),           # bias column
            ],
            out_specs=pl.BlockSpec((1, N, t_hw), lambda b, j: (b, 0, j)),
        ),
        compiler_params=pltpu.CompilerParams(
            dimension_semantics=("parallel", "parallel")),
        cost_estimate=cost,
    )(x3, w, b2)

    if HWp != HW:
        out = out[:, :, :HW]
    return out.reshape(B, N, H, W)                # free reshape: already NCHW


# ----------------------------------------------------------------------------
# OutConv forward (PyTorch semantics: NCHW in, NCHW out, 1x1 conv with bias)
#   params["w"] : (C_out, C_in)  == PyTorch conv.weight[:, :, 0, 0]
#   params["b"] : (C_out,)       == PyTorch conv.bias
# ----------------------------------------------------------------------------
def out_conv_forward(params, x_nchw):
    return conv1x1_nchw(x_nchw, params["w"], params["b"])


# ----------------------------------------------------------------------------
if __name__ == "__main__":
    key = jax.random.PRNGKey(0)
    kx, kw, kb = jax.random.split(key, 3)

    # OutConv(64, 1) as used at the tail of the Resunet, small spatial input.
    B, C_IN, C_OUT, H, W = 2, 64, 1, 16, 16
    x = jax.random.normal(kx, (B, C_IN, H, W), jnp.float32)

    # PyTorch Conv2d default init: U(-1/sqrt(fan_in), 1/sqrt(fan_in)), fan_in = C_in
    bound = 1.0 / (C_IN ** 0.5)
    w = jax.random.uniform(kw, (C_OUT, C_IN), jnp.float32, -bound, bound)
    b = jax.random.uniform(kb, (C_OUT,), jnp.float32, -bound, bound)
    params = {"w": w, "b": b}

    fwd = jax.jit(out_conv_forward)
    out = jax.block_until_ready(fwd(params, x))

    assert out.shape == (B, C_OUT, H, W), out.shape
    assert bool(jnp.all(jnp.isfinite(out)))

    # Plain-JAX f32 reference; tolerance accounts for per-tile bf16 MXU operands
    # (accumulation is f32).
    ref = jnp.einsum("nc,bchw->bnhw", w, x) + b[None, :, None, None]
    max_err = float(jnp.max(jnp.abs(out - ref)))
    assert jnp.allclose(out, ref, rtol=2e-2, atol=2e-2), max_err

    print("KERNEL_OK")
</pallas_src>

<mosaic_0001>
module attributes {stable_mosaic.version = 11 : i64} {
  func.func @_conv1x1_kernel(%arg0: i32, %arg1: i32, %arg2: memref<1x64x256xf32, #tpu.memory_space<vmem>>, %arg3: memref<1x64xf32, #tpu.memory_space<vmem>>, %arg4: memref<1x1xf32, #tpu.memory_space<vmem>>, %arg5: memref<1x1x256xf32, #tpu.memory_space<vmem>>) attributes {dimension_semantics = [#tpu.dimension_semantics<parallel>, #tpu.dimension_semantics<parallel>], iteration_bounds = array<i64: 2, 1>, scalar_prefetch = 0 : i64, scratch_operands = 0 : i64, tpu.core_type = #tpu.core_type<tc>, window_params = [{transform_indices = @transform_0, window_bounds = array<i64: 1, 64, 256>}, {pipeline_mode = #tpu.pipeline_mode<synchronous>, transform_indices = @transform_1, window_bounds = array<i64: 1, 64>}, {pipeline_mode = #tpu.pipeline_mode<synchronous>, transform_indices = @transform_2, window_bounds = array<i64: 1, 1>}, {transform_indices = @transform_3, window_bounds = array<i64: 1, 1, 256>}]} {
    %c0 = arith.constant 0 : index
    %c0_0 = arith.constant 0 : index
    %c0_1 = arith.constant 0 : index
    %0 = vector.load %arg2[%c0, %c0_0, %c0_1] : memref<1x64x256xf32, #tpu.memory_space<vmem>>, vector<1x64x256xf32>
    %1 = vector.shape_cast %0 : vector<1x64x256xf32> to vector<64x256xf32>
    %2 = arith.truncf %1 : vector<64x256xf32> to vector<64x256xbf16>
    %c0_2 = arith.constant 0 : index
    %c0_3 = arith.constant 0 : index
    %3 = vector.load %arg3[%c0_2, %c0_3] : memref<1x64xf32, #tpu.memory_space<vmem>>, vector<1x64xf32>
    %4 = arith.truncf %3 : vector<1x64xf32> to vector<1x64xbf16>
    %cst = arith.constant dense<0.000000e+00> : vector<1x256xf32>
    %5 = tpu.matmul %4, %2, %cst {dimension_numbers = #tpu.dot_dimension_numbers<[1], [0], [0], [1], [0, 0, 1, 1], [], []>} : vector<1x64xbf16>, vector<64x256xbf16>, vector<1x256xf32> -> vector<1x256xf32>
    %c0_4 = arith.constant 0 : index
    %c0_5 = arith.constant 0 : index
    %6 = vector.load %arg4[%c0_4, %c0_5] : memref<1x1xf32, #tpu.memory_space<vmem>>, vector<1x1xf32>
    %7 = vector.broadcast %6 : vector<1x1xf32> to vector<1x256xf32>
    %8 = arith.addf %5, %7 : vector<1x256xf32>
    %c0_6 = arith.constant 0 : index
    %c0_7 = arith.constant 0 : index
    %c0_8 = arith.constant 0 : index
    %9 = vector.load %arg5[%c0_6, %c0_7, %c0_8] : memref<1x1x256xf32, #tpu.memory_space<vmem>>, vector<1x1x256xf32>
    %10 = vector.shape_cast %9 : vector<1x1x256xf32> to vector<1x256xf32>
    %11 = vector.shape_cast %8 : vector<1x256xf32> to vector<1x1x256xf32>
    tpu.vector_store %arg5[%c0_6, %c0_7, %c0_8], %11 {strides = array<i32>} : memref<1x1x256xf32, #tpu.memory_space<vmem>>, vector<1x1x256xf32>,
    return
  }
  func.func @transform_0(%arg0: i32, %arg1: i32) -> (i32, i32, i32) {
    %c0_i32 = arith.constant 0 : i32
    %c0_i32_0 = arith.constant 0 : i32
    return %arg0, %c0_i32, %arg1 : i32, i32, i32
  }
  func.func @transform_1(%arg0: i32, %arg1: i32) -> (i32, i32) {
    %c0_i32 = arith.constant 0 : i32
    %c0_i32_0 = arith.constant 0 : i32
    %c0_i32_1 = arith.constant 0 : i32
    return %c0_i32, %c0_i32_0 : i32, i32
  }
  func.func @transform_2(%arg0: i32, %arg1: i32) -> (i32, i32) {
    %c0_i32 = arith.constant 0 : i32
    %c0_i32_0 = arith.constant 0 : i32
    %c0_i32_1 = arith.constant 0 : i32
    return %c0_i32, %c0_i32_0 : i32, i32
  }
  func.func @transform_3(%arg0: i32, %arg1: i32) -> (i32, i32, i32) {
    %c0_i32 = arith.constant 0 : i32
    %c0_i32_0 = arith.constant 0 : i32
    return %arg0, %c0_i32, %arg1 : i32, i32, i32
  }
}

</mosaic_0001>

<bundles_post_ra>
// kernel: out_conv_forward.1
= control target key start
LH: loop header
LB: loop body
LE: loop exit
PB: predicated region body
PF: predicated region fallthrough
CT: control target
= control target key end

     0   :  { %s484_s14 = smov 0   ;;  %s486_s15 = smov 0   ;;  %s524_s0 = inlined_call_operand.vmem [shape: f32[2,64,256], index: 0, kind: input, shape index: {}]   ;;  %s525_s1 = inlined_call_operand.vmem [shape: f32[1,64], index: 1, kind: input, shape index: {}]   ;;  %s526_s2 = inlined_call_operand.<no memory space> [shape: f32[1,1], index: 2, kind: input, shape index: {}]   ;;  %s527_s3 = inlined_call_operand.vmem [shape: f32[2,1,256], index: 3, kind: output, shape index: {}]  }
   0x1   :  { %v8_v0 = vstv %s526_s2  ;;  %s488_s16 = smov 0  }
   0x2   :  { %9 = vst [vmem:[#allocation2] sm:$0x1] %v8_v0 }
   0x3 LB: > { %s27_s2 = sadd.s32 1, %s453_s15  ;;  %p400_p0 = scmp.ge.s32.totalorder %s457_s16, 1  ;;  %s457_s16 = sphi %s488_s16, %s15_s16   ;;  %s453_s15 = sphi %s486_s15, %s529_s15   ;;  %s449_s14 = sphi %s484_s14, %s528_s14  }
   0x4   : > { %p29_p1 = scmp.ge.s32.totalorder %s27_s2, 2  ;;  %p160_p2 = scmp.lt.s32.totalorder %s457_s16, 3 }
   0x6   : > { %s531_s2 = smov (%p29_p1, %s27_s2), 0  ;;  %p161_p3 = pnand %p400_p0, %p160_p2 }
   0x7   : > { %p192_p4 = scmp.lt.s32.totalorder (!%p161_p3), %s449_s14, 1 }
   0x8   : > { %164 = sbr.rel (%p161_p3) target bundleno = 239 (0xef), region = 32 }
   0xd   : > { %v459_v1 = vmov 0   ;;  %v237_v2 = vld [vmem:[#allocation2] sm:$0x1]  ;;  %s533_s14 = smov (!%p192_p4, %s449_s14), 1  ;;  %vm247_vm0 = vcmask 523264   ;;  %v243_v29 = vlaneseq }
   0xe   : > { %283 = vmatprep.mubr.bf16.mxu0 %v459_v1  ;;  %434 = vset.pattern.permute.xlu0 %v459_v1  ;;  %s407_s17 = sshll.u32 %s533_s14, 7  ;;  %v235_v27 = vld [vmem:[%s525_s1] sm:$0x1]  ;;  %v460_v32 = vmov 1966171168   ;;  %s403_s23 = sshll.u32 %s533_s14, 1 }
   0xf   : > { %240 = vperm.xlu0 %434, %v237_v2   ;;  %s199_s20 = scalar_lea.vmem %s524_s0, %s407_s17  ;;  %v236_v28 = vpack.c.bf16 %v235_v27, %v235_v27  ;;  %v244_v30 = vshrl.u32 %v243_v29, 7  ;;  %v296_v33 = vunpack.c.l.s4 %v460_v32  ;;  %vm312_vm1 = vcmp.lt.s32.totalorder %v243_v29, 256  ;;  %s208_s26 = scalar_lea.vmem %s527_s3, %s403_s23 }
  0x10   : > { %v224_v3 = vld [vmem:[%s199_s20 + $0x68] sm:$0xff]  ;;  %v226_v4 = vld [vmem:[%s199_s20 + $0x78] sm:$0xff]  ;;  %v223_v5 = vld [vmem:[%s199_s20 + $0x60] sm:$0xff] }
  0x11   : > { %v234_v6 = vpack.c.bf16 %v226_v4, %v224_v3  ;;  %v225_v7 = vld [vmem:[%s199_s20 + $0x70] sm:$0xff]  ;;  %v220_v8 = vld [vmem:[%s199_s20 + $0x48] sm:$0xff]  ;;  %v222_v9 = vld [vmem:[%s199_s20 + $0x58] sm:$0xff]  ;;  %v245_v31 = vsub.s32 0, %v244_v30  ;;  %v297_v36 = vunpack.c.0.s8 %v296_v33 }
  0x12   : > { %v233_v10 = vpack.c.bf16 %v225_v7, %v223_v5  ;;  %v232_v11 = vpack.c.bf16 %v222_v9, %v220_v8  ;;  %v219_v12 = vld [vmem:[%s199_s20 + $0x40] sm:$0xff]  ;;  %v221_v13 = vld [vmem:[%s199_s20 + $0x50] sm:$0xff]  ;;  %v216_v14 = vld [vmem:[%s199_s20 + $0x28] sm:$0xff] }
  0x13   : > { %259 = vmatprep.subr.bf16.mxu0 %v234_v6  ;;  %v218_v15 = vld [vmem:[%s199_s20 + $0x38] sm:$0xff]  ;;  %v231_v16 = vpack.c.bf16 %v221_v13, %v219_v12  ;;  %v215_v18 = vld [vmem:[%s199_s20 + $0x20] sm:$0xff]  ;;  %v217_v19 = vld [vmem:[%s199_s20 + $0x30] sm:$0xff]  ;;  %v300_v41 = vsub.s32 %v297_v36, %v244_v30 }
  0x14   : > { %260 = vmatpush1.bf16.msra.mxu0 %v233_v10  ;;  %v230_v17 = vpack.c.bf16 %v218_v15, %v216_v14  ;;  %v212_v20 = vld [vmem:[%s199_s20 + $0x8] sm:$0xff]  ;;  %v214_v21 = vld [vmem:[%s199_s20 + $0x18] sm:$0xff]  ;;  %v229_v22 = vpack.c.bf16 %v217_v19, %v215_v18  ;;  %v211_v24 = vld [vmem:[%s199_s20] sm:$0xff] }
  0x15   : > { %261 = vmatprep.subr.bf16.mxu0 %v232_v11  ;;  %v228_v23 = vpack.c.bf16 %v214_v21, %v212_v20  ;;  %v213_v25 = vld [vmem:[%s199_s20 + $0x10] sm:$0xff] }
  0x16   : > { %v227_v26 = vpack.c.bf16 %v213_v25, %v211_v24 }
  0x18   : > { %262 = vmatpush1.bf16.msra.mxu0 %v231_v16 }
  0x19   : > { %263 = vmatprep.subr.bf16.mxu0 %v230_v17 }
  0x1c   : > { %264 = vmatpush1.bf16.msra.mxu0 %v229_v22 }
  0x1d   : > { %265 = vmatprep.subr.bf16.mxu0 %v228_v23 }
  0x20   : > { %266 = vmatpush1.bf16.msra.mxu0 %v227_v26 }
  0x23   : > { %404 = vmatmul.mubr.msk.bf16.vlgmr.msra.gmra.mxu0 %vm247_vm0, %v236_v28 }
  0x8a   : > { %v241_v34 = vpop.permute.xlu0 %240 }
  0x8b   : > { %v246_v35 = vrot.slane %v241_v34, %v245_v31 }
  0xe3   : > { %v285_v37 = vpop.f32.mrf.mxu0 }
  0xe4   : > { %v286_v39 = vadd.f32 %v285_v37, %v246_v35 }
  0xe5   : > { %v287_v38 = vpop.f32.mrf.mxu0 }
  0xe6   : > { %v288_v40 = vadd.f32 %v287_v38, %v246_v35 }
  0xe7   : > { %v289_v42 = vpop.f32.mrf.mxu0 }
  0xe8   : > { %v294_v43 = vcombine.low %v286_v39, %v288_v40 }
  0xe9   : > { %v290_v44 = vpop.f32.mrf.mxu0 }
  0xea   : > { %v301_v45 = vrot.slane %v294_v43, %v300_v41 }
  0xec   : > { %v308_v46 = vrot.slane %v301_v45, %v300_v41 }
  0xee   : > { %314 = vst.msk [vmem:[%s208_s26] sm:$0x3] %vm312_vm1, %v308_v46 }
  0xef PF: > { %s15_s16 = sadd.s32 1, %s457_s16   ;;  %s528_s14 = smov %s453_s15 }
  0xf0   : > { %p12_p5 = scmp.ge.s32.totalorder %s15_s16, 4   ;;  %s529_s15 = smov %s531_s2 }
  0xf2   :  { %14 = sbr.rel (!%p12_p5) target bundleno = 3 (0x3), region = 62 }

</bundles_post_ra>
